<compile_context>
chip_gen: v6e
topology: v6e:2x2x1
jax: 0.10.0
libtpu: 0.0.40
codegen_flags: <defaults>
</compile_context>

<pallas_src>
import functools

import numpy as np
import jax
import jax.numpy as jnp
from jax.experimental import pallas as pl
from jax.experimental.pallas import tpu as pltpu


def _round_up(n, m):
    return ((n + m - 1) // m) * m


# ----------------------------- Pallas kernel --------------------------------

def _network_kernel(x_ref, w1_ref, b1_ref, w2_ref, b2_ref, out_ref):
    # bf16 MXU matmuls with f32 accumulation; biases / ReLU in f32 (VPU).
    h = jnp.dot(x_ref[...], w1_ref[...],
                preferred_element_type=jnp.float32) + b1_ref[...]
    h = jnp.maximum(h, 0.0).astype(jnp.bfloat16)
    out = jnp.dot(h, w2_ref[...],
                  preferred_element_type=jnp.float32) + b2_ref[...]
    # W2/b2 are pre-padded to a 128-lane output -> unmasked, lane-dense bf16 store.
    out_ref[...] = out.astype(out_ref.dtype)


def network_pallas(x, w1, b1, w2, b2):
    """Fused 2-layer MLP (augment affine already folded into w1/b1). Call under jit."""
    B, L = x.shape
    H = w1.shape[1]
    C = w2.shape[1]

    # Batch tiling: multiple of 16 sublanes (bf16 packing), capped at 1024 rows,
    # and split into >= 2 grid steps when possible so both v7x TCs are used.
    SUB = 16
    Bq = _round_up(B, SUB)
    TILE_B = min(1024, Bq)
    if Bq > SUB:
        TILE_B = min(TILE_B, max(SUB, _round_up((Bq + 1) // 2, SUB)))
    Bp = _round_up(Bq, TILE_B)
    # Lane-dense logits: pad output feature dim to a multiple of 128.
    Cp = _round_up(C, 128)

    if Bp != B:
        x = jnp.pad(x, ((0, Bp - B), (0, 0)))
    if Cp != C:
        w2 = jnp.pad(w2, ((0, 0), (0, Cp - C)))
        b2 = jnp.pad(b2, ((0, 0), (0, Cp - C)))

    # bf16 transfers / MXU inputs; biases stay f32.
    x_bf = x.astype(jnp.bfloat16)
    w1_bf = w1.astype(jnp.bfloat16)
    w2_bf = w2.astype(jnp.bfloat16)

    grid = (Bp // TILE_B,)
    out = pl.pallas_call(
        _network_kernel,
        out_shape=jax.ShapeDtypeStruct((Bp, Cp), jnp.bfloat16),
        grid_spec=pltpu.PrefetchScalarGridSpec(
            num_scalar_prefetch=0,
            grid=grid,
            in_specs=[
                pl.BlockSpec((TILE_B, L), lambda i: (i, 0)),   # x   : batch-tiled bf16
                pl.BlockSpec((L, H),      lambda i: (0, 0)),   # W1  : VMEM-resident bf16
                pl.BlockSpec((1, H),      lambda i: (0, 0)),   # b1  : f32
                pl.BlockSpec((H, Cp),     lambda i: (0, 0)),   # W2  : lane-padded bf16
                pl.BlockSpec((1, Cp),     lambda i: (0, 0)),   # b2  : lane-padded f32
            ],
            out_specs=pl.BlockSpec((TILE_B, Cp), lambda i: (i, 0)),
        ),
        compiler_params=pltpu.CompilerParams(
            dimension_semantics=("parallel",),      # megacore / v7x 2-TC sharding
            vmem_limit_bytes=16 * 1024 * 1024,      # footprint is < 1 MiB double-buffered
        ),
    )(x_bf, w1_bf, b1, w2_bf, b2)
    # Padded rows [B:Bp] / lanes [C:Cp] carry garbage by construction; slice them off.
    return out[:B, :C].astype(jnp.float32)


# -------------------- device-side augment-coefficient math -------------------
# All traced (no .item()/float()/int() host syncs); loops are tiny static Python
# loops over num_ops / num_sub_policies, exactly mirroring the PyTorch loops.

def _diff_augment_coeffs(probability, probability_index):
    """(a, b) such that DifferentiableAugment forward value == a * x + b."""
    L = probability.shape[0]
    idx = jnp.zeros((), jnp.int32)
    for i in range(L):
        idx = idx + (probability_index[i].astype(jnp.int32) << i)
    a = jnp.zeros((), jnp.float32)
    b = jnp.zeros((), jnp.float32)
    for selection in range(2 ** L):
        tp = jnp.ones((), jnp.float32)
        for i in range(L):
            if selection & (1 << i):
                tp = tp * probability[i]
            else:
                tp = tp * (1.0 - probability[i])
        is_sel = (idx == selection)
        a = a + jnp.where(is_sel, tp, 0.0)   # coefficient of x
        b = b + jnp.where(is_sel, 0.0, tp)   # scalar contribution
    return a, b


def _mixed_augment_coeffs(sample_probs, sample_probs_index, sample_ops_weights,
                          ops_weights_index):
    """(a, b) such that MixedAugment forward value == a * x + b."""
    num_sub = sample_probs.shape[0]
    a_tot = jnp.zeros((), jnp.float32)
    b_tot = jnp.zeros((), jnp.float32)
    for i in range(num_sub):
        w = sample_ops_weights[i]
        ai, bi = _diff_augment_coeffs(sample_probs[i], sample_probs_index[i])
        is_sel = (ops_weights_index == i)
        a_tot = a_tot + jnp.where(is_sel, w * ai, 0.0)
        b_tot = b_tot + jnp.where(is_sel, w * bi, w)
    return a_tot, b_tot


def _fold_affine(w1, b1, a, b):
    """Exact identity: (a*x + b) @ W1 + b1 == x @ (a*W1) + (b*colsum(W1) + b1)."""
    w1_eff = a * w1
    b1_eff = b1 + b * jnp.sum(w1, axis=0, keepdims=True)
    return w1_eff, b1_eff


@functools.partial(jax.jit, static_argnames=("is_augmenting",))
def network_forward(x, w1, b1, w2, b2,
                    sample_probs, sample_probs_index, sample_ops_weights,
                    ops_weights_index, is_augmenting):
    if is_augmenting:
        a, b = _mixed_augment_coeffs(sample_probs, sample_probs_index,
                                     sample_ops_weights, ops_weights_index)
    else:
        a = jnp.float32(1.0)
        b = jnp.float32(0.0)
    # Fold the MixedAugment affine into the first layer (wrapper-side, O(L*H)).
    w1_eff, b1_eff = _fold_affine(w1, b1, a, b)
    return network_pallas(x, w1_eff, b1_eff, w2, b2)


# ------------------------------ Network module -------------------------------

class Network:
    def __init__(self, input_length, num_classes, sub_policies, hidden=32,
                 temperature=0.1, seed=0):
        self.input_length = input_length
        self.num_classes = num_classes
        self.sub_policies = sub_policies
        self.temperature = temperature

        num_sub = len(sub_policies)
        num_ops = len(sub_policies[0])
        # _initialize_augment_parameters (matches PyTorch __init__):
        self.probabilities = 0.5 * jnp.ones((num_sub, num_ops), jnp.float32)
        self.magnitudes = 0.5 * jnp.ones((num_sub, num_ops), jnp.float32)
        self.ops_weights = 0.001 * jnp.ones((num_sub,), jnp.float32)

        # Default (un-sampled) state so the plain path never breaks.
        self.sample_probabilities = jnp.zeros((num_sub, num_ops), jnp.float32)
        self.sample_probabilities_index = jnp.zeros((num_sub, num_ops), bool)
        self.sample_ops_weights = jnp.zeros((num_sub,), jnp.float32)
        self.sample_ops_weights_index = jnp.zeros((), jnp.int32)

        # Backbone (stand-in for get_model), deterministic init.
        # Note: scaled-up backbones should pick 128-aligned hidden/output dims.
        k1, k2 = jax.random.split(jax.random.PRNGKey(seed + 123))
        self.w1 = (jax.random.normal(k1, (input_length, hidden), jnp.float32)
                   / np.sqrt(input_length))
        self.b1 = jnp.zeros((1, hidden), jnp.float32)
        self.w2 = (jax.random.normal(k2, (hidden, num_classes), jnp.float32)
                   / np.sqrt(hidden))
        self.b2 = jnp.zeros((1, num_classes), jnp.float32)

    def sample(self, key):
        """Mirror of Network.sample(): RelaxedBernoulli + RelaxedOneHotCategorical
        with straight-through forward values.  Fully device-side (no host syncs)."""
        k1, k2 = jax.random.split(key)
        # RelaxedBernoulli(temperature, probs).rsample()
        u = jax.random.uniform(k1, self.probabilities.shape,
                               minval=1e-6, maxval=1.0 - 1e-6)
        logits = jnp.log(self.probabilities) - jnp.log1p(-self.probabilities)
        logistic = jnp.log(u) - jnp.log1p(-u)
        sp = jax.nn.sigmoid((logits + logistic) / self.temperature)
        sp = jnp.clip(sp, 0.0, 1.0)
        self.sample_probabilities_index = (sp >= 0.5)
        # straight-through: forward value == index.float()
        self.sample_probabilities = self.sample_probabilities_index.astype(jnp.float32)
        # RelaxedOneHotCategorical(temperature, logits=ops_weights).rsample()
        g = jax.random.gumbel(k2, self.ops_weights.shape)
        sw = jax.nn.softmax((self.ops_weights + g) / self.temperature)
        sw = jnp.clip(sw, 0.0, 1.0)
        self.sample_ops_weights_index = jnp.argmax(sw).astype(jnp.int32)   # device scalar
        # straight-through: forward value == one-hot
        self.sample_ops_weights = jax.nn.one_hot(
            self.sample_ops_weights_index, self.ops_weights.shape[0], dtype=jnp.float32)

    def forward(self, x, is_augmenting):
        return network_forward(
            x, self.w1, self.b1, self.w2, self.b2,
            self.sample_probabilities, self.sample_probabilities_index,
            self.sample_ops_weights, self.sample_ops_weights_index,
            is_augmenting=bool(is_augmenting))


# ------------------------------ reference (pure JAX) --------------------------

def _ref_forward(x, w1, b1, w2, b2, a, b):
    """Pure-JAX reference mirroring the kernel's bf16 dataflow exactly."""
    w1_eff, b1_eff = _fold_affine(w1, b1, a, b)
    xb = x.astype(jnp.bfloat16)
    w1b = w1_eff.astype(jnp.bfloat16)
    w2b = w2.astype(jnp.bfloat16)
    h = jnp.dot(xb, w1b, preferred_element_type=jnp.float32) + b1_eff
    h = jnp.maximum(h, 0.0).astype(jnp.bfloat16)
    out = jnp.dot(h, w2b, preferred_element_type=jnp.float32) + b2
    return out.astype(jnp.bfloat16).astype(jnp.float32)


# ---------------------------------- main -------------------------------------

if __name__ == "__main__":
    # Small shapes consistent with the module.
    batch = 2
    input_length = 32
    num_classes = 10
    hidden = 32
    sub_policies = [("ShearX", "TranslateY"),
                    ("Rotate", "Color"),
                    ("Invert", "Contrast")]   # 3 sub-policies x 2 ops each

    key = jax.random.PRNGKey(0)
    kx, ks = jax.random.split(key)
    x = jax.random.normal(kx, (batch, input_length), jnp.float32)

    net = Network(input_length, num_classes, sub_policies, hidden=hidden, seed=0)
    net.sample(ks)

    out_aug = net.forward(x, is_augmenting=True)
    out_plain = net.forward(x, is_augmenting=False)
    jax.block_until_ready(out_aug)
    jax.block_until_ready(out_plain)

    # Pure-JAX reference check of the fused kernel (same device-side coefficients
    # and the same bf16 dataflow).
    a, b = _mixed_augment_coeffs(net.sample_probabilities,
                                 net.sample_probabilities_index,
                                 net.sample_ops_weights,
                                 net.sample_ops_weights_index)
    ref_aug = _ref_forward(x, net.w1, net.b1, net.w2, net.b2, a, b)
    ref_plain = _ref_forward(x, net.w1, net.b1, net.w2, net.b2,
                             jnp.float32(1.0), jnp.float32(0.0))
    np.testing.assert_allclose(np.asarray(out_aug), np.asarray(ref_aug),
                               rtol=2e-2, atol=2e-2)
    np.testing.assert_allclose(np.asarray(out_plain), np.asarray(ref_plain),
                               rtol=2e-2, atol=2e-2)

    assert out_aug.shape == (batch, num_classes)
    assert out_plain.shape == (batch, num_classes)
    print("KERNEL_OK")
</pallas_src>

<mosaic_0001>
module attributes {stable_mosaic.version = 11 : i64} {
  func.func @_network_kernel(%arg0: i32, %arg1: memref<16x32xbf16, #tpu.memory_space<vmem>>, %arg2: memref<32x32xbf16, #tpu.memory_space<vmem>>, %arg3: memref<1x32xf32, #tpu.memory_space<vmem>>, %arg4: memref<32x128xbf16, #tpu.memory_space<vmem>>, %arg5: memref<1x128xf32, #tpu.memory_space<vmem>>, %arg6: memref<16x128xbf16, #tpu.memory_space<vmem>>) attributes {dimension_semantics = [#tpu.dimension_semantics<parallel>], iteration_bounds = array<i64: 1>, scalar_prefetch = 0 : i64, scratch_operands = 0 : i64, tpu.core_type = #tpu.core_type<tc>, window_params = [{transform_indices = @transform_0, window_bounds = array<i64: 16, 32>}, {pipeline_mode = #tpu.pipeline_mode<synchronous>, transform_indices = @transform_1, window_bounds = array<i64: 32, 32>}, {pipeline_mode = #tpu.pipeline_mode<synchronous>, transform_indices = @transform_2, window_bounds = array<i64: 1, 32>}, {pipeline_mode = #tpu.pipeline_mode<synchronous>, transform_indices = @transform_3, window_bounds = array<i64: 32, 128>}, {pipeline_mode = #tpu.pipeline_mode<synchronous>, transform_indices = @transform_4, window_bounds = array<i64: 1, 128>}, {transform_indices = @transform_5, window_bounds = array<i64: 16, 128>}]} {
    %c0 = arith.constant 0 : index
    %c0_0 = arith.constant 0 : index
    %0 = vector.load %arg1[%c0, %c0_0] : memref<16x32xbf16, #tpu.memory_space<vmem>>, vector<16x32xbf16>
    %c0_1 = arith.constant 0 : index
    %c0_2 = arith.constant 0 : index
    %1 = vector.load %arg2[%c0_1, %c0_2] : memref<32x32xbf16, #tpu.memory_space<vmem>>, vector<32x32xbf16>
    %cst = arith.constant dense<0.000000e+00> : vector<16x32xf32>
    %2 = tpu.matmul %0, %1, %cst {dimension_numbers = #tpu.dot_dimension_numbers<[1], [0], [0], [1], [0, 0, 1, 1], [], []>} : vector<16x32xbf16>, vector<32x32xbf16>, vector<16x32xf32> -> vector<16x32xf32>
    %c0_3 = arith.constant 0 : index
    %c0_4 = arith.constant 0 : index
    %3 = vector.load %arg3[%c0_3, %c0_4] : memref<1x32xf32, #tpu.memory_space<vmem>>, vector<1x32xf32>
    %4 = vector.broadcast %3 : vector<1x32xf32> to vector<16x32xf32>
    %5 = arith.addf %2, %4 : vector<16x32xf32>
    %cst_5 = arith.constant 0.000000e+00 : f32
    %6 = vector.broadcast %cst_5 : f32 to vector<16x32xf32>
    %7 = arith.maximumf %5, %6 : vector<16x32xf32>
    %8 = arith.truncf %7 : vector<16x32xf32> to vector<16x32xbf16>
    %c0_6 = arith.constant 0 : index
    %c0_7 = arith.constant 0 : index
    %9 = vector.load %arg4[%c0_6, %c0_7] : memref<32x128xbf16, #tpu.memory_space<vmem>>, vector<32x128xbf16>
    %cst_8 = arith.constant dense<0.000000e+00> : vector<16x128xf32>
    %10 = tpu.matmul %8, %9, %cst_8 {dimension_numbers = #tpu.dot_dimension_numbers<[1], [0], [0], [1], [0, 0, 1, 1], [], []>} : vector<16x32xbf16>, vector<32x128xbf16>, vector<16x128xf32> -> vector<16x128xf32>
    %c0_9 = arith.constant 0 : index
    %c0_10 = arith.constant 0 : index
    %11 = vector.load %arg5[%c0_9, %c0_10] : memref<1x128xf32, #tpu.memory_space<vmem>>, vector<1x128xf32>
    %12 = vector.broadcast %11 : vector<1x128xf32> to vector<16x128xf32>
    %13 = arith.addf %10, %12 : vector<16x128xf32>
    %14 = arith.truncf %13 : vector<16x128xf32> to vector<16x128xbf16>
    %c0_11 = arith.constant 0 : index
    %c0_12 = arith.constant 0 : index
    %15 = vector.load %arg6[%c0_11, %c0_12] : memref<16x128xbf16, #tpu.memory_space<vmem>>, vector<16x128xbf16>
    tpu.vector_store %arg6[%c0_11, %c0_12], %14 {strides = array<i32>} : memref<16x128xbf16, #tpu.memory_space<vmem>>, vector<16x128xbf16>,
    return
  }
  func.func @transform_0(%arg0: i32) -> (i32, i32) {
    %c0_i32 = arith.constant 0 : i32
    %c0_i32_0 = arith.constant 0 : i32
    return %arg0, %c0_i32 : i32, i32
  }
  func.func @transform_1(%arg0: i32) -> (i32, i32) {
    %c0_i32 = arith.constant 0 : i32
    %c0_i32_0 = arith.constant 0 : i32
    %c0_i32_1 = arith.constant 0 : i32
    return %c0_i32, %c0_i32_0 : i32, i32
  }
  func.func @transform_2(%arg0: i32) -> (i32, i32) {
    %c0_i32 = arith.constant 0 : i32
    %c0_i32_0 = arith.constant 0 : i32
    %c0_i32_1 = arith.constant 0 : i32
    return %c0_i32, %c0_i32_0 : i32, i32
  }
  func.func @transform_3(%arg0: i32) -> (i32, i32) {
    %c0_i32 = arith.constant 0 : i32
    %c0_i32_0 = arith.constant 0 : i32
    %c0_i32_1 = arith.constant 0 : i32
    return %c0_i32, %c0_i32_0 : i32, i32
  }
  func.func @transform_4(%arg0: i32) -> (i32, i32) {
    %c0_i32 = arith.constant 0 : i32
    %c0_i32_0 = arith.constant 0 : i32
    %c0_i32_1 = arith.constant 0 : i32
    return %c0_i32, %c0_i32_0 : i32, i32
  }
  func.func @transform_5(%arg0: i32) -> (i32, i32) {
    %c0_i32 = arith.constant 0 : i32
    %c0_i32_0 = arith.constant 0 : i32
    return %arg0, %c0_i32 : i32, i32
  }
}

</mosaic_0001>

<bundles_post_ra>
// kernel: network_forward.1
= control target key start
LH: loop header
LB: loop body
LE: loop exit
PB: predicated region body
PF: predicated region fallthrough
CT: control target
= control target key end

     0   :  { %v227_v0 = vmov 0.0   ;;  %vm228_vm0 = vmmov 0   ;;  %vm51_vm1 = vcmask 261120   ;;  %s285_s1 = inlined_call_operand.vmem [shape: bf16[32,32], index: 1, kind: input, shape index: {}]   ;;  %s286_s0 = inlined_call_operand.vmem [shape: bf16[16,32], index: 0, kind: input, shape index: {}]   ;;  %s287_s3 = inlined_call_operand.vmem [shape: bf16[32,128], index: 3, kind: input, shape index: {}]   ;;  %s288_s2 = inlined_call_operand.vmem [shape: f32[1,32], index: 2, kind: input, shape index: {}]   ;;  %s289_s4 = inlined_call_operand.vmem [shape: f32[1,128], index: 4, kind: input, shape index: {}]   ;;  %s290_s5 = inlined_call_operand.vmem [shape: bf16[16,128], index: 5, kind: output, shape index: {}]  }
   0x1   :  { %204 = vmatprep.subr.bf16.mxu0 %v227_v0  ;;  %v222_v1 = vld [vmem:[%s285_s1 + $0x8] sm:$0xff]   ;;  %208 = vmatprep.mubr.msk.bf16.mxu0 %vm228_vm0, %v227_v0  ;;  %v223_v2 = vld [vmem:[%s285_s1] sm:$0xff]  }
   0x2   :  { %212 = vmatprep.subr.bf16.mxu1 %v227_v0  ;;  %216 = vmatprep.mubr.msk.bf16.mxu1 %vm228_vm0, %v227_v0  ;;  %v224_v3 = vld [vmem:[%s286_s0] sm:$0xff]   ;;  %v225_v4 = vld [vmem:[%s287_s3 + $0x8] sm:$0xff]  }
   0x3   :  { %205 = vmatpush3.bf16.msra.mxu0 %v222_v1  ;;  %213 = vmatpush3.bf16.msra.mxu1 %v225_v4  ;;  %v226_v5 = vld [vmem:[%s287_s3] sm:$0xff]  }
   0x4   :  { %206 = vmatprep.subr.bf16.mxu0 %v227_v0  ;;  %214 = vmatprep.subr.bf16.mxu1 %v227_v0  ;;  %v180_v6 = vld [vmem:[%s288_s2] ss:$0 sm:$0xff] }
   0x5   :  { %v185_v17 = vld [vmem:[%s289_s4] ss:$0 sm:$0xff] }
   0x7   :  { %207 = vmatpush3.bf16.msra.mxu0 %v223_v2  ;;  %215 = vmatpush3.bf16.msra.mxu1 %v226_v5 }
   0xa   :  { %209 = vmatmul.mubr.msk.bf16.vlgmr.msra.gmra.mxu0 %vm51_vm1, %v224_v3 }
  0xca   :  { %v89_v7 = vpop.f32.mrf.mxu0 }
  0xcb   :  { %v90_v9 = vadd.f32 %v180_v6, %v89_v7 }
  0xcc   :  { %v210_v8 = vpop.f32.mrf.mxu0 }
  0xcd   :  { %v96_v13 = vmax.f32 %v90_v9, 0.0 }
  0xce   :  { %v92_v10 = vpop.f32.mrf.mxu0 }
  0xcf   :  { %v93_v11 = vadd.f32 %v180_v6, %v92_v10 }
  0xd0   :  { %v211_v12 = vpop.f32.mrf.mxu0 }
  0xd1   :  { %v97_v14 = vmax.f32 %v93_v11, 0.0 }
  0xd3   :  { %v98_v15 = vpack.c.bf16 %v97_v14, %v96_v13 }
  0xd5   :  { %217 = vmatmul.mubr.msk.bf16.vlgmr.msra.gmra.mxu1 %vm51_vm1, %v98_v15 }
 0x195   :  { %v159_v16 = vpop.f32.mrf.mxu1 }
 0x196   :  { %v160_v20 = vadd.f32 %v185_v17, %v159_v16 }
 0x197   :  { %v218_v18 = vpop.f32.mrf.mxu1 }
 0x199   :  { %v162_v19 = vpop.f32.mrf.mxu1 }
 0x19a   :  { %v163_v21 = vadd.f32 %v185_v17, %v162_v19 }
 0x19b   :  { %v219_v22 = vpop.f32.mrf.mxu1 }
 0x19c   :  { %v196_v23 = vpack.c.bf16 %v163_v21, %v160_v20 }
 0x19e   :  { %197 = vst [vmem:[%s290_s5] sm:$0xff] %v196_v23  }

</bundles_post_ra>
